<compile_context>
chip_gen: v7x
topology: tpu7x:2x2x1
jax: 0.10.0
libtpu: 0.0.40
codegen_flags: <defaults>
</compile_context>

<pallas_src>
import time

import jax
import jax.numpy as jnp
from jax.experimental import pallas as pl
from jax.experimental.pallas import tpu as pltpu

_F_IN = 10          # nn.Linear in_features
_F_OUT = 1          # nn.Linear out_features
_LANE = 128         # TPU lane width
_MAX_TILE_B = 1024  # batch tile (lane axis) for the gridded large-B path


# ----------------------------------------------------------------------------
# Pallas kernel: Linear(10 -> 1) on the VPU, batch on the lane axis
# ----------------------------------------------------------------------------
def _linear_kernel(xt_ref, w_ref, b_ref, o_ref):
    """o[0, b] = sum_f xt[f, b] * w[f, 0] + bias.

    xt: (F_IN, TB) VMEM  -- batch on the lane axis (lane-dense)
    w : (F_IN, 1)  VMEM  -- weight column, broadcast across lanes
    b : (1,)       SMEM  -- bias scalar
    o : (1, TB)    VMEM  -- lane-dense output row (unmasked stores)
    """
    prod = xt_ref[...] * w_ref[...]                                   # VPU broadcast multiply
    o_ref[...] = jnp.sum(prod, axis=0, keepdims=True) + b_ref[0]      # XLU sublane reduce + bias


@jax.jit
def _dummy_linear_padded(xt_pad, w_col, b1):
    """Pallas call on an already padded/transposed (F_IN, B_pad) input."""
    f_in, b_pad = xt_pad.shape
    out_shape = jax.ShapeDtypeStruct((1, b_pad), jnp.float32)

    if b_pad <= _MAX_TILE_B:
        # Small batch: whole-array, gridless -> no pipeline-step overhead.
        return pl.pallas_call(
            _linear_kernel,
            out_shape=out_shape,
            in_specs=[
                pl.BlockSpec(memory_space=pltpu.MemorySpace.VMEM),   # x^T
                pl.BlockSpec(memory_space=pltpu.MemorySpace.VMEM),   # weight column
                pl.BlockSpec(memory_space=pltpu.MemorySpace.SMEM),   # bias scalar (1,)
            ],
            out_specs=pl.BlockSpec(memory_space=pltpu.MemorySpace.VMEM),
        )(xt_pad, w_col, b1)

    # Large batch: 1-D parallel grid over lane-major batch tiles.
    # b_pad is a multiple of _MAX_TILE_B by construction (_bucket_batch).
    n_blocks = b_pad // _MAX_TILE_B
    return pl.pallas_call(
        _linear_kernel,
        out_shape=out_shape,
        grid=(n_blocks,),
        in_specs=[
            pl.BlockSpec((f_in, _MAX_TILE_B), lambda i: (0, i)),     # x^T tile
            pl.BlockSpec((f_in, _F_OUT), lambda i: (0, 0)),          # weight (resident)
            pl.BlockSpec(memory_space=pltpu.MemorySpace.SMEM),       # bias scalar (1,)
        ],
        out_specs=pl.BlockSpec((1, _MAX_TILE_B), lambda i: (0, i)),
        compiler_params=pltpu.CompilerParams(
            dimension_semantics=("parallel",),   # megacore split on v7x
        ),
    )(xt_pad, w_col, b1)


def _ceil_to(n: int, m: int) -> int:
    return ((n + m - 1) // m) * m


def _bucket_batch(b: int) -> int:
    """Bucket B to a multiple of 128 lanes (and of the tile for large B)."""
    b_pad = max(_LANE, _ceil_to(b, _LANE))
    if b_pad > _MAX_TILE_B:
        b_pad = _ceil_to(b_pad, _MAX_TILE_B)
    return b_pad


def dummy_linear(x: jax.Array, w_col: jax.Array, b1: jax.Array) -> jax.Array:
    """y = x @ w_col + b1  (== nn.Linear(10, 1)(x)).  x: (B, 10) -> (B, 1)."""
    if x.dtype != jnp.float32:
        x = x.astype(jnp.float32)
    b = x.shape[0]
    b_pad = _bucket_batch(b)
    xt = x.T                                        # (F_IN, B): batch -> lane axis
    if b_pad != b:
        xt = jnp.pad(xt, ((0, 0), (0, b_pad - b)))
    y_row = _dummy_linear_padded(xt, w_col, b1)     # (1, B_pad), lane-dense
    return y_row[:, :b].T                           # (B, 1), matches nn.Linear


# ----------------------------------------------------------------------------
# DummyStage equivalent (compute-relevant parts only)
# ----------------------------------------------------------------------------
class DummyStage:
    """极简占位阶段 - JAX/Pallas version of the PyTorch DummyStage."""

    IN_FEATURES = _F_IN
    OUT_FEATURES = _F_OUT

    def __init__(self, seed: int = 0):
        # Deterministic init mimicking nn.Linear's uniform(-1/sqrt(fan_in), +).
        key = jax.random.PRNGKey(seed)
        kw, kb = jax.random.split(key)
        bound = 1.0 / float(self.IN_FEATURES) ** 0.5
        # Weight stored directly in the (in, out) = (10, 1) column layout the
        # kernel broadcasts across lanes (== nn.Linear weight transposed).
        self.weight_col = jax.random.uniform(
            kw, (self.IN_FEATURES, self.OUT_FEATURES), jnp.float32, -bound, bound
        )
        # Bias as a flat 1-D scalar for SMEM (4 B, no padded 2-D slab).
        self.bias1 = jax.random.uniform(
            kb, (self.OUT_FEATURES,), jnp.float32, -bound, bound
        )
        # Default dummy_input is built once (no per-call PRNG dispatch).
        self._default_input = jax.random.normal(
            jax.random.PRNGKey(1), (1, self.IN_FEATURES), jnp.float32
        )
        # TODO(synk): threading/Queue worker loop, node_comm, logging and
        # perf-stat bookkeeping from BaseStage have no Pallas equivalent.

    def process(self, dummy_input=None):
        """极简处理 - 什么都不做 (runs the dummy linear, discards result)."""
        if dummy_input is None:
            dummy_input = self._default_input
        _ = dummy_linear(dummy_input, self.weight_col, self.bias1)
        return None

    def forward(self, *args, **kwargs):
        """不接收任何数据，不发送任何数据"""
        time.sleep(0.001)
        return None

    def get_state_dict_prefix(self):
        return {}


# ----------------------------------------------------------------------------
# Main
# ----------------------------------------------------------------------------
if __name__ == "__main__":
    stage = DummyStage(seed=0)

    # (1, 10): same shape process() uses.  Gridless, bucket B_pad = 128.
    x = jax.random.normal(jax.random.PRNGKey(0), (1, _F_IN), jnp.float32)
    y = jax.block_until_ready(dummy_linear(x, stage.weight_col, stage.bias1))
    y_ref = x @ stage.weight_col + stage.bias1
    assert y.shape == (1, 1)
    assert jnp.allclose(y, y_ref, atol=1e-5), (y, y_ref)

    # Small batched path (gridless, same bucket as B=1 -> no recompile).
    xb = jax.random.normal(jax.random.PRNGKey(2), (8, _F_IN), jnp.float32)
    yb = jax.block_until_ready(dummy_linear(xb, stage.weight_col, stage.bias1))
    yb_ref = xb @ stage.weight_col + stage.bias1
    assert yb.shape == (8, 1)
    assert jnp.allclose(yb, yb_ref, atol=1e-5), (yb, yb_ref)

    # Larger batch exercising the gridded "parallel" path (B_pad=3072, grid=3).
    xl = jax.random.normal(jax.random.PRNGKey(3), (2500, _F_IN), jnp.float32)
    yl = jax.block_until_ready(dummy_linear(xl, stage.weight_col, stage.bias1))
    yl_ref = xl @ stage.weight_col + stage.bias1
    assert yl.shape == (2500, 1)
    assert jnp.allclose(yl, yl_ref, atol=1e-5), "gridded path mismatch"

    # Exercise the module-level API the same way the PyTorch class does.
    assert stage.process(x) is None
    assert stage.process() is None
    assert stage.forward() is None

    print("KERNEL_OK")
</pallas_src>

<mosaic_0001>
module attributes {stable_mosaic.version = 11 : i64} {
  func.func @_linear_kernel(%arg0: memref<10x128xf32, #tpu.memory_space<vmem>>, %arg1: memref<10x1xf32, #tpu.memory_space<vmem>>, %arg2: memref<1xf32, #tpu.memory_space<smem>>, %arg3: memref<1x128xf32, #tpu.memory_space<vmem>>) attributes {dimension_semantics = [], scalar_prefetch = 0 : i64, scratch_operands = 0 : i64, tpu.core_type = #tpu.core_type<tc>} {
    %c0 = arith.constant 0 : index
    %c0_0 = arith.constant 0 : index
    %0 = vector.load %arg0[%c0, %c0_0] : memref<10x128xf32, #tpu.memory_space<vmem>>, vector<10x128xf32>
    %c0_1 = arith.constant 0 : index
    %c0_2 = arith.constant 0 : index
    %1 = vector.load %arg1[%c0_1, %c0_2] : memref<10x1xf32, #tpu.memory_space<vmem>>, vector<10x1xf32>
    %2 = vector.broadcast %1 : vector<10x1xf32> to vector<10x128xf32>
    %3 = arith.mulf %0, %2 : vector<10x128xf32>
    %cst = arith.constant dense<0.000000e+00> : vector<128xf32>
    %4 = vector.multi_reduction <add>, %3, %cst [0] : vector<10x128xf32> to vector<128xf32>
    %5 = vector.shape_cast %4 : vector<128xf32> to vector<1x128xf32>
    %c0_3 = arith.constant 0 : index
    %6 = memref.load %arg2[%c0_3] : memref<1xf32, #tpu.memory_space<smem>>
    %7 = vector.broadcast %6 : f32 to vector<1x128xf32>
    %8 = arith.addf %5, %7 : vector<1x128xf32>
    %c0_4 = arith.constant 0 : index
    %c0_5 = arith.constant 0 : index
    %9 = vector.load %arg3[%c0_4, %c0_5] : memref<1x128xf32, #tpu.memory_space<vmem>>, vector<1x128xf32>
    tpu.vector_store %arg3[%c0_4, %c0_5], %8 {strides = array<i32>} : memref<1x128xf32, #tpu.memory_space<vmem>>, vector<1x128xf32>,
    return
  }
}

</mosaic_0001>

<bundles_post_ra>
// kernel: _dummy_linear_padded.1
= control target key start
LH: loop header
LB: loop body
LE: loop exit
PB: predicated region body
PF: predicated region fallthrough
CT: control target
= control target key end

     0   :  { %v86_v1 = vmov 0   ;;  %s135_s0 = inlined_call_operand.vmem [shape: f32[10,128], index: 0, kind: input, shape index: {}]   ;;  %s136_s1 = inlined_call_operand.vmem [shape: f32[10,1], index: 1, kind: input, shape index: {}]   ;;  %s137_s2 = inlined_call_operand.<no memory space> [shape: f32[1], index: 2, kind: input, shape index: {}]   ;;  %s138_s3 = inlined_call_operand.hbm [shape: f32[1,128], index: 3, kind: output, shape index: {}]  }
   0x1   :  { %v19_v0 = vld [vmem:[%s136_s1 + $0x8] sm:$0x3]  ;;  %61 = vset.pattern.permute.xlu0 %v86_v1 }
   0x2   :  { %9 = vsyncpa [#allocation4], 0  ;;  %27 = vperm.xlu0 %61, %v19_v0   ;;  %v18_v2 = vld [vmem:[%s136_s1] sm:$0xff]  ;;  %v17_v3 = vld [vmem:[%s135_s0 + $0x8] sm:$0x3]  ;;  %vm32_vm0 = vcmask 1041408   ;;  %v42_v16 = vstv %s137_s2 }
   0x3   :  { %v16_v6 = vld [vmem:[%s135_s0] sm:$0xff]  ;;  %s87_s21 = smov [#allocation3]  }
   0x4   :  { %s51_s22 = sshll.u32 %s87_s21, 4  ;;  %s52_s22 = int_to_ptr.vmem [resolvable:$true] %s51_s22 }
   0x5   :  { %s62_s0 = scalar_lea.vmem %s52_s22, 16  ;;  %s66_s23 = scalar_lea.vmem %s52_s22, 32 }
   0x6   :  { %22 = vperm.xlu0 %61, %v18_v2   ;;  %p63_p0 = scmp.ne.s32.totalorder %s52_s22, %s62_s0  ;;  %p67_p1 = scmp.lt.s32.totalorder %s52_s22, %s52_s22 }
   0x7   :  { %p68_p2 = scmp.lt.s32.totalorder %s66_s23, %s62_s0 }
   0x9   :  { %p69_p3 = por %p68_p2, %p67_p1 }
   0xb   :  { %p70_p4 = pnand %p69_p3, %p63_p0 }
  0x81   :  { %v28_v4 = vpop.permute.xlu0 %27 }
  0x82   :  { %v31_v5 = vmul.f32 %v28_v4, %v17_v3 }
  0x84   :  { %v33_v9 = vsel %vm32_vm0, %v31_v5, 0.0 }
  0x85   :  { %v23_v7 = vpop.permute.xlu0 %22 }
  0x86   :  { %v30_v8 = vmul.f32 %v23_v7, %v16_v6 }
  0x88   :  { %v34_v10 = vadd.f32 %v33_v9, %v30_v8 }
  0x8a   :  { %v35_v11 = vrot.slane %v34_v10, 4 }
  0x8c   :  { %v36_v12 = vadd.f32 %v35_v11, %v34_v10 }
  0x8e   :  { %v37_v13 = vrot.slane %v36_v12, 2 }
  0x90   :  { %v38_v14 = vadd.f32 %v37_v13, %v36_v12 }
  0x92   :  { %v39_v15 = vrot.slane %v38_v14, 1 }
  0x94   :  { %v40_v17 = vadd.f32 %v39_v15, %v38_v14 }
  0x96   :  { %v43_v18 = vadd.f32 %v42_v16, %v40_v17 }
  0x98   :  { %44 = vst [vmem:[#allocation3] sm:$0x1] %v43_v18 }
  0x99   :  { %73 = shalt.err (!%p70_p4)
}
  0x9a   :  { %s74_s26 = scalar_lea.hbm %s138_s3, 16 }
  0x9b   :  { %p75_p5 = scmp.ne.s32.totalorder %s138_s3, %s74_s26  ;;  %p78_p6 = scmp.lt.u32.totalorder %s74_s26, %s138_s3 }
  0x9d   :  { %p80_p7 = pnand %p78_p6, %p75_p5 }
  0x9f   :  { %83 = shalt.err (!%p80_p7)
}
  0xa0   :  { %54 = dma.vmem_to_hbm [thread:$0]  %s52_s22, 16, %s138_s3, [#allocation4]  }
  0xa1   :  { %84 = dma.done.wait [#allocation4], 16  }
  0xa2   :  { %85 = vsyncadd [#allocation4], 4294967280 }
  0xa3   :  { %58 = vsyncpa [#allocation4], 1 }

</bundles_post_ra>
